<compile_context>
chip_gen: v7x
topology: tpu7x:2x2x1
jax: 0.10.0
libtpu: 0.0.40
codegen_flags: <defaults>
</compile_context>

<pallas_src>
import functools

import jax
import jax.numpy as jnp
from jax import lax
from jax.experimental import pallas as pl
from jax.experimental.pallas import tpu as pltpu


def _round_up(x: int, m: int) -> int:
    return (x + m - 1) // m * m


def _i32c(v: int):
    """32-bit hash constant as a signed int32 (two's-complement wraparound)."""
    v &= 0xFFFFFFFF
    if v >= 1 << 31:
        v -= 1 << 32
    return jnp.int32(v)


def _mlp_kernel(seed_ref, x_ref, w1_ref, b1_ref, w2_ref, b2_ref, o_ref, *,
                dropout_rate: float, training: bool, tile_rows: int):
    # fc1: bf16 MXU inputs, f32 accumulation; bias + ReLU in f32.
    h = jnp.dot(x_ref[...], w1_ref[...], preferred_element_type=jnp.float32)
    h = h + b1_ref[...]                      # (1, H_p) broadcasts over batch tile
    h = jnp.maximum(h, 0.0)

    if training and dropout_rate > 0.0:
        # Stateless counter-based hash -> Bernoulli keep mask (inverted dropout).
        # Uses only int32 elementwise ops, so it lowers everywhere.
        rows = (lax.broadcasted_iota(jnp.int32, h.shape, 0)
                + pl.program_id(0) * tile_rows)          # global row index
        cols = lax.broadcasted_iota(jnp.int32, h.shape, 1)
        v = (rows * _i32c(0x9E3779B1)
             + cols * _i32c(0xC2B2AE3D)
             + seed_ref[0] * _i32c(0x27D4EB2F))
        v = v ^ jnp.right_shift(v, 15)
        v = v * _i32c(0x85EBCA77)
        v = v ^ jnp.right_shift(v, 13)
        v = v * _i32c(0xC2B2AE35)
        v = v ^ jnp.right_shift(v, 16)
        r = jnp.bitwise_and(v, jnp.int32((1 << 23) - 1))   # 23 uniform bits, >= 0
        thresh = jnp.int32(int(dropout_rate * (1 << 23)))  # keep prob = 1 - p
        keep = r >= thresh
        h = jnp.where(keep, h, 0.0) * jnp.float32(1.0 / (1.0 - dropout_rate))

    # fc2: cast activations to bf16 for the MXU, accumulate in f32.
    out = jnp.dot(h.astype(jnp.bfloat16), w2_ref[...],
                  preferred_element_type=jnp.float32)
    out = out + b2_ref[...]
    o_ref[...] = out.astype(o_ref.dtype)


def feature_encoder_forward(x, w1, b1, w2, b2, seed, *, dropout_rate=0.5,
                            training=True, max_tile_b=256):
    """x: [B, F]; w1: [F, H]; b1: [H]; w2: [H, O]; b2: [O]  (weights stored
    transposed vs. PyTorch nn.Linear, i.e. [in_features, out_features])."""
    B, F = x.shape
    H = w1.shape[1]
    O = w2.shape[1]
    if training:
        assert 0.0 <= dropout_rate < 1.0

    # Lane-dense feature dims; batch padded to the chosen tile.
    H_p = _round_up(H, 128)
    O_p = _round_up(O, 128)
    if B <= max_tile_b:
        tile_b = _round_up(B, 16)        # single grid step for small batches
        B_p = tile_b
    else:
        tile_b = max_tile_b              # sized well under VMEM even on v7x (64 MiB)
        B_p = _round_up(B, tile_b)

    # Zero-padding is exact: padded H columns produce 0 after fc1+ReLU+dropout and
    # contribute 0 through the zero rows of w2; padded O columns are sliced off.
    x_p = jnp.zeros((B_p, F), jnp.bfloat16).at[:B, :].set(x.astype(jnp.bfloat16))
    w1_p = jnp.zeros((F, H_p), jnp.bfloat16).at[:, :H].set(w1.astype(jnp.bfloat16))
    b1_p = jnp.zeros((1, H_p), jnp.float32).at[:, :H].set(
        b1.reshape(1, H).astype(jnp.float32))
    w2_p = jnp.zeros((H_p, O_p), jnp.bfloat16).at[:H, :O].set(w2.astype(jnp.bfloat16))
    b2_p = jnp.zeros((1, O_p), jnp.float32).at[:, :O].set(
        b2.reshape(1, O).astype(jnp.float32))
    seed_arr = jnp.asarray([seed], dtype=jnp.int32)

    kernel = functools.partial(_mlp_kernel, dropout_rate=float(dropout_rate),
                               training=bool(training), tile_rows=tile_b)

    grid_spec = pltpu.PrefetchScalarGridSpec(
        num_scalar_prefetch=1,                               # seed lives in SMEM
        grid=(B_p // tile_b,),
        in_specs=[
            pl.BlockSpec((tile_b, F), lambda i, seed: (i, 0)),   # x tile
            pl.BlockSpec((F, H_p),    lambda i, seed: (0, 0)),   # w1 (resident)
            pl.BlockSpec((1, H_p),    lambda i, seed: (0, 0)),   # b1
            pl.BlockSpec((H_p, O_p),  lambda i, seed: (0, 0)),   # w2 (resident)
            pl.BlockSpec((1, O_p),    lambda i, seed: (0, 0)),   # b2
        ],
        out_specs=pl.BlockSpec((tile_b, O_p), lambda i, seed: (i, 0)),
    )

    out_p = pl.pallas_call(
        kernel,
        out_shape=jax.ShapeDtypeStruct((B_p, O_p), jnp.float32),
        grid_spec=grid_spec,
        compiler_params=pltpu.CompilerParams(
            dimension_semantics=("parallel",)),   # stateless RNG -> safe to shard
    )(seed_arr, x_p, w1_p, b1_p, w2_p, b2_p)

    return out_p[:B, :O]


if __name__ == "__main__":
    # feature_encoder defaults: hidden_size=128, output_size=128, dropout=0.5.
    # Small graph-feature matrix: 8 nodes x 16 input features.
    B, F, H, O = 8, 16, 128, 128
    p = 0.5

    key = jax.random.PRNGKey(0)
    kx, k1, k2, k3, k4 = jax.random.split(key, 5)
    x = jax.random.normal(kx, (B, F), dtype=jnp.float32)

    bound1 = 1.0 / jnp.sqrt(F)
    w1 = jax.random.uniform(k1, (F, H), jnp.float32, -bound1, bound1)
    b1 = jax.random.uniform(k2, (H,),   jnp.float32, -bound1, bound1)
    bound2 = 1.0 / jnp.sqrt(H)
    w2 = jax.random.uniform(k3, (H, O), jnp.float32, -bound2, bound2)
    b2 = jax.random.uniform(k4, (O,),   jnp.float32, -bound2, bound2)

    # Training-mode forward (dropout active) — exercises the full kernel path.
    out_train = feature_encoder_forward(x, w1, b1, w2, b2, seed=1234,
                                        dropout_rate=p, training=True)
    jax.block_until_ready(out_train)
    assert out_train.shape == (B, O) and out_train.dtype == jnp.float32

    # Eval-mode forward (dropout off) vs. plain-JAX reference with the same
    # bf16-cast inputs.
    out_eval = feature_encoder_forward(x, w1, b1, w2, b2, seed=1234,
                                       dropout_rate=p, training=False)
    jax.block_until_ready(out_eval)
    xb = x.astype(jnp.bfloat16).astype(jnp.float32)
    w1b = w1.astype(jnp.bfloat16).astype(jnp.float32)
    w2b = w2.astype(jnp.bfloat16).astype(jnp.float32)
    h_ref = jnp.maximum(xb @ w1b + b1, 0.0)
    ref = h_ref.astype(jnp.bfloat16).astype(jnp.float32) @ w2b + b2
    err = float(jnp.max(jnp.abs(out_eval - ref)))
    assert err < 5e-2, f"max abs err {err}"

    # TODO(synk): VGAE_FrameWork's encoder/decoder/classifier submodules are
    # injected dependencies with no concrete definition in the spec; only the
    # feature_encoder MLP (get_z / generate_feature_vec path) is kernelized here.
    print("KERNEL_OK")
</pallas_src>

<mosaic_0001>
module attributes {stable_mosaic.version = 11 : i64} {
  func.func @_mlp_kernel(%arg0: i32, %arg1: memref<1xi32, #tpu.memory_space<smem>>, %arg2: memref<16x16xbf16, #tpu.memory_space<vmem>>, %arg3: memref<16x128xbf16, #tpu.memory_space<vmem>>, %arg4: memref<1x128xf32, #tpu.memory_space<vmem>>, %arg5: memref<128x128xbf16, #tpu.memory_space<vmem>>, %arg6: memref<1x128xf32, #tpu.memory_space<vmem>>, %arg7: memref<16x128xf32, #tpu.memory_space<vmem>>) attributes {dimension_semantics = [#tpu.dimension_semantics<parallel>], iteration_bounds = array<i64: 1>, scalar_prefetch = 1 : i64, scratch_operands = 0 : i64, tpu.core_type = #tpu.core_type<tc>, window_params = [{transform_indices = @transform_0, window_bounds = array<i64: 16, 16>}, {pipeline_mode = #tpu.pipeline_mode<synchronous>, transform_indices = @transform_1, window_bounds = array<i64: 16, 128>}, {pipeline_mode = #tpu.pipeline_mode<synchronous>, transform_indices = @transform_2, window_bounds = array<i64: 1, 128>}, {pipeline_mode = #tpu.pipeline_mode<synchronous>, transform_indices = @transform_3, window_bounds = array<i64: 128, 128>}, {pipeline_mode = #tpu.pipeline_mode<synchronous>, transform_indices = @transform_4, window_bounds = array<i64: 1, 128>}, {transform_indices = @transform_5, window_bounds = array<i64: 16, 128>}]} {
    %c0 = arith.constant 0 : index
    %c0_0 = arith.constant 0 : index
    %0 = vector.load %arg2[%c0, %c0_0] : memref<16x16xbf16, #tpu.memory_space<vmem>>, vector<16x16xbf16>
    %c0_1 = arith.constant 0 : index
    %c0_2 = arith.constant 0 : index
    %1 = vector.load %arg3[%c0_1, %c0_2] : memref<16x128xbf16, #tpu.memory_space<vmem>>, vector<16x128xbf16>
    %cst = arith.constant dense<0.000000e+00> : vector<16x128xf32>
    %2 = tpu.matmul %0, %1, %cst {dimension_numbers = #tpu.dot_dimension_numbers<[1], [0], [0], [1], [0, 0, 1, 1], [], []>} : vector<16x16xbf16>, vector<16x128xbf16>, vector<16x128xf32> -> vector<16x128xf32>
    %c0_3 = arith.constant 0 : index
    %c0_4 = arith.constant 0 : index
    %3 = vector.load %arg4[%c0_3, %c0_4] : memref<1x128xf32, #tpu.memory_space<vmem>>, vector<1x128xf32>
    %4 = vector.broadcast %3 : vector<1x128xf32> to vector<16x128xf32>
    %5 = arith.addf %2, %4 : vector<16x128xf32>
    %cst_5 = arith.constant 0.000000e+00 : f32
    %6 = vector.broadcast %cst_5 : f32 to vector<16x128xf32>
    %7 = arith.maximumf %5, %6 : vector<16x128xf32>
    %8 = tpu.iota {dimensions = array<i32: 0>} : vector<16x128xi32>
    %c16_i32 = arith.constant 16 : i32
    %9 = arith.muli %arg0, %c16_i32 : i32
    %10 = vector.broadcast %9 : i32 to vector<16x128xi32>
    %11 = arith.addi %8, %10 : vector<16x128xi32>
    %12 = tpu.iota {dimensions = array<i32: 1>} : vector<16x128xi32>
    %c-1640531535_i32 = arith.constant -1640531535 : i32
    %13 = vector.broadcast %c-1640531535_i32 : i32 to vector<16x128xi32>
    %14 = arith.muli %11, %13 : vector<16x128xi32>
    %c-1028477379_i32 = arith.constant -1028477379 : i32
    %15 = vector.broadcast %c-1028477379_i32 : i32 to vector<16x128xi32>
    %16 = arith.muli %12, %15 : vector<16x128xi32>
    %17 = arith.addi %14, %16 : vector<16x128xi32>
    %c0_6 = arith.constant 0 : index
    %18 = memref.load %arg1[%c0_6] : memref<1xi32, #tpu.memory_space<smem>>
    %c668265263_i32 = arith.constant 668265263 : i32
    %19 = arith.muli %18, %c668265263_i32 : i32
    %20 = vector.broadcast %19 : i32 to vector<16x128xi32>
    %21 = arith.addi %17, %20 : vector<16x128xi32>
    %c15_i32 = arith.constant 15 : i32
    %22 = vector.broadcast %c15_i32 : i32 to vector<16x128xi32>
    %23 = arith.shrsi %21, %22 : vector<16x128xi32>
    %24 = arith.xori %21, %23 : vector<16x128xi32>
    %c-2048144777_i32 = arith.constant -2048144777 : i32
    %25 = vector.broadcast %c-2048144777_i32 : i32 to vector<16x128xi32>
    %26 = arith.muli %24, %25 : vector<16x128xi32>
    %c13_i32 = arith.constant 13 : i32
    %27 = vector.broadcast %c13_i32 : i32 to vector<16x128xi32>
    %28 = arith.shrsi %26, %27 : vector<16x128xi32>
    %29 = arith.xori %26, %28 : vector<16x128xi32>
    %c-1028477387_i32 = arith.constant -1028477387 : i32
    %30 = vector.broadcast %c-1028477387_i32 : i32 to vector<16x128xi32>
    %31 = arith.muli %29, %30 : vector<16x128xi32>
    %c16_i32_7 = arith.constant 16 : i32
    %32 = vector.broadcast %c16_i32_7 : i32 to vector<16x128xi32>
    %33 = arith.shrsi %31, %32 : vector<16x128xi32>
    %34 = arith.xori %31, %33 : vector<16x128xi32>
    %c8388607_i32 = arith.constant 8388607 : i32
    %35 = vector.broadcast %c8388607_i32 : i32 to vector<16x128xi32>
    %36 = arith.andi %34, %35 : vector<16x128xi32>
    %c4194304_i32 = arith.constant 4194304 : i32
    %37 = vector.broadcast %c4194304_i32 : i32 to vector<16x128xi32>
    %38 = arith.cmpi sge, %36, %37 : vector<16x128xi32>
    %cst_8 = arith.constant 0.000000e+00 : f32
    %39 = vector.broadcast %cst_8 : f32 to vector<16x128xf32>
    %40 = arith.select %38, %7, %39 : vector<16x128xi1>, vector<16x128xf32>
    %cst_9 = arith.constant 2.000000e+00 : f32
    %41 = vector.broadcast %cst_9 : f32 to vector<16x128xf32>
    %42 = arith.mulf %40, %41 : vector<16x128xf32>
    %43 = arith.truncf %42 : vector<16x128xf32> to vector<16x128xbf16>
    %c0_10 = arith.constant 0 : index
    %c0_11 = arith.constant 0 : index
    %44 = vector.load %arg5[%c0_10, %c0_11] : memref<128x128xbf16, #tpu.memory_space<vmem>>, vector<128x128xbf16>
    %cst_12 = arith.constant dense<0.000000e+00> : vector<16x128xf32>
    %45 = tpu.matmul %43, %44, %cst_12 {dimension_numbers = #tpu.dot_dimension_numbers<[1], [0], [0], [1], [0, 0, 1, 1], [], []>} : vector<16x128xbf16>, vector<128x128xbf16>, vector<16x128xf32> -> vector<16x128xf32>
    %c0_13 = arith.constant 0 : index
    %c0_14 = arith.constant 0 : index
    %46 = vector.load %arg6[%c0_13, %c0_14] : memref<1x128xf32, #tpu.memory_space<vmem>>, vector<1x128xf32>
    %47 = vector.broadcast %46 : vector<1x128xf32> to vector<16x128xf32>
    %48 = arith.addf %45, %47 : vector<16x128xf32>
    %c0_15 = arith.constant 0 : index
    %c0_16 = arith.constant 0 : index
    %49 = vector.load %arg7[%c0_15, %c0_16] : memref<16x128xf32, #tpu.memory_space<vmem>>, vector<16x128xf32>
    tpu.vector_store %arg7[%c0_15, %c0_16], %48 {strides = array<i32>} : memref<16x128xf32, #tpu.memory_space<vmem>>, vector<16x128xf32>,
    return
  }
  func.func @transform_0(%arg0: i32, %arg1: memref<1xi32, #tpu.memory_space<smem>>) -> (i32, i32) {
    %c0_i32 = arith.constant 0 : i32
    %c0_i32_0 = arith.constant 0 : i32
    return %arg0, %c0_i32 : i32, i32
  }
  func.func @transform_1(%arg0: i32, %arg1: memref<1xi32, #tpu.memory_space<smem>>) -> (i32, i32) {
    %c0_i32 = arith.constant 0 : i32
    %c0_i32_0 = arith.constant 0 : i32
    %c0_i32_1 = arith.constant 0 : i32
    return %c0_i32, %c0_i32_0 : i32, i32
  }
  func.func @transform_2(%arg0: i32, %arg1: memref<1xi32, #tpu.memory_space<smem>>) -> (i32, i32) {
    %c0_i32 = arith.constant 0 : i32
    %c0_i32_0 = arith.constant 0 : i32
    %c0_i32_1 = arith.constant 0 : i32
    return %c0_i32, %c0_i32_0 : i32, i32
  }
  func.func @transform_3(%arg0: i32, %arg1: memref<1xi32, #tpu.memory_space<smem>>) -> (i32, i32) {
    %c0_i32 = arith.constant 0 : i32
    %c0_i32_0 = arith.constant 0 : i32
    %c0_i32_1 = arith.constant 0 : i32
    return %c0_i32, %c0_i32_0 : i32, i32
  }
  func.func @transform_4(%arg0: i32, %arg1: memref<1xi32, #tpu.memory_space<smem>>) -> (i32, i32) {
    %c0_i32 = arith.constant 0 : i32
    %c0_i32_0 = arith.constant 0 : i32
    %c0_i32_1 = arith.constant 0 : i32
    return %c0_i32, %c0_i32_0 : i32, i32
  }
  func.func @transform_5(%arg0: i32, %arg1: memref<1xi32, #tpu.memory_space<smem>>) -> (i32, i32) {
    %c0_i32 = arith.constant 0 : i32
    %c0_i32_0 = arith.constant 0 : i32
    return %arg0, %c0_i32 : i32, i32
  }
}

</mosaic_0001>

<bundles_post_ra>
// kernel: tpu_custom_call.1
= control target key start
LH: loop header
LB: loop body
LE: loop exit
PB: predicated region body
PF: predicated region fallthrough
CT: control target
= control target key end

     0   :  { %12 = vsyncpa [#allocation5], 0  ;;  %s592_s0 = inlined_call_operand.<no memory space> [shape: s32[1], index: 0, kind: input, shape index: {}]   ;;  %s593_s1 = inlined_call_operand.hbm [shape: bf16[16,16], index: 1, kind: input, shape index: {}]   ;;  %s594_s2 = inlined_call_operand.hbm [shape: bf16[16,128], index: 2, kind: input, shape index: {}]   ;;  %s595_s3 = inlined_call_operand.vmem [shape: f32[1,128], index: 3, kind: input, shape index: {}]   ;;  %s596_s4 = inlined_call_operand.hbm [shape: bf16[128,128], index: 4, kind: input, shape index: {}]   ;;  %s597_s5 = inlined_call_operand.vmem [shape: f32[1,128], index: 5, kind: input, shape index: {}]   ;;  %s598_s6 = inlined_call_operand.hbm [shape: f32[16,128], index: 6, kind: output, shape index: {}]  }
   0x1   :  { %13 = vsyncpa [#allocation8], 0 }
   0x2   :  { %14 = vsyncpa [#allocation6], 0  ;;  %s474_s21 = smov [#allocation7]   ;;  %s475_s23 = smov [#allocation4]  }
   0x3   :  { %s32_s22 = sshll.u32 %s474_s21, 4  ;;  %s20_s24 = sshll.u32 %s475_s23, 4  ;;  %s33_s22 = int_to_ptr.vmem [resolvable:$true] %s32_s22  ;;  %s519_s24 = int_to_ptr.vmem [resolvable:$true] %s20_s24 }
   0x4   :  { %s380_s27 = scalar_lea.hbm %s594_s2, 128 }
   0x5   :  { %p381_p0 = scmp.ne.s32.totalorder %s594_s2, %s380_s27  ;;  %p384_p1 = scmp.lt.u32.totalorder %s380_s27, %s594_s2 }
   0x7   :  { %p386_p2 = pnand %p384_p1, %p381_p0 }
   0x9   :  { %389 = shalt.err (!%p386_p2)
}
   0xa   :  { %s390_s8 = scalar_lea.vmem %s33_s22, 128  ;;  %p395_p4 = scmp.lt.s32.totalorder %s33_s22, %s33_s22 }
   0xb   :  { %p391_p3 = scmp.ne.s32.totalorder %s33_s22, %s390_s8  ;;  %p396_p5 = scmp.lt.s32.totalorder %s390_s8, %s390_s8 }
   0xd   :  { %p397_p6 = por %p396_p5, %p395_p4 }
   0xf   :  { %p398_p7 = pnand %p397_p6, %p391_p3 }
  0x11   :  { %401 = shalt.err (!%p398_p7)
}
  0x12   :  { %s476_s9 = smov 64   ;;  %s477_s10 = smov 4  }
  0x13   :  { %38 = dma.hbm_to_vmem [thread:$0]  %s594_s2, 128, %s33_s22, [#allocation8], %s476_s9, %s476_s9, %s477_s10  }
  0x14   :  { %s402_s15 = scalar_lea.hbm %s593_s1, 128 }
  0x15   :  { %p403_p8 = scmp.ne.s32.totalorder %s593_s1, %s402_s15  ;;  %p406_p9 = scmp.lt.u32.totalorder %s402_s15, %s593_s1 }
  0x17   :  { %p408_p10 = pnand %p406_p9, %p403_p8 }
  0x19   :  { %411 = shalt.err (!%p408_p10)
}
  0x1a   :  { %s412_s20 = scalar_lea.vmem %s519_s24, 128  ;;  %p417_p12 = scmp.lt.s32.totalorder %s519_s24, %s519_s24 }
  0x1b   :  { %p413_p11 = scmp.ne.s32.totalorder %s519_s24, %s412_s20  ;;  %p418_p13 = scmp.lt.s32.totalorder %s412_s20, %s412_s20 }
  0x1d   :  { %p419_p0 = por %p418_p13, %p417_p12 }
  0x1f   :  { %p420_p1 = pnand %p419_p0, %p413_p11 }
  0x21   :  { %423 = shalt.err (!%p420_p1)
}
  0x22   :  { %26 = dma.hbm_to_vmem [thread:$0]  %s593_s1, 128, %s519_s24, [#allocation5], %s476_s9, %s476_s9, %s477_s10  }
  0x23   :  { %s478_s22 = smov [#allocation9]   ;;  %s424_s27 = scalar_lea.hbm %s596_s4, 1024 }
  0x24   :  { %s46_s23 = sshll.u32 %s478_s22, 4  ;;  %p425_p2 = scmp.ne.s32.totalorder %s596_s4, %s424_s27  ;;  %s47_s23 = int_to_ptr.vmem [resolvable:$true] %s46_s23 }
  0x25   :  { %p428_p3 = scmp.lt.u32.totalorder %s424_s27, %s596_s4 }
  0x27   :  { %p430_p4 = pnand %p428_p3, %p425_p2 }
  0x29   :  { %433 = shalt.err (!%p430_p4)
}
  0x2a   :  { %s434_s8 = scalar_lea.vmem %s47_s23, 1024  ;;  %p439_p6 = scmp.lt.s32.totalorder %s47_s23, %s47_s23 }
  0x2b   :  { %p435_p5 = scmp.ne.s32.totalorder %s47_s23, %s434_s8  ;;  %p440_p7 = scmp.lt.s32.totalorder %s434_s8, %s434_s8 }
  0x2d   :  { %p441_p8 = por %p440_p7, %p439_p6 }
  0x2f   :  { %p442_p9 = pnand %p441_p8, %p435_p5 }
  0x31   :  { %445 = shalt.err (!%p442_p9)
}
  0x32   :  { %52 = dma.hbm_to_vmem [thread:$0]  %s596_s4, 1024, %s47_s23, [#allocation8], %s476_s9, %s476_s9, %s477_s10  }
  0x33   :  { %468 = dma.done.wait [#allocation5], 128  }
  0x34   :  { %469 = vsyncadd [#allocation5], 4294967168 }
  0x35   :  { %470 = dma.done.wait [#allocation8], 1152  }
  0x36   :  { %471 = vsyncadd [#allocation8], 4294966144  ;;  %v479_v0 = vmov 0.0   ;;  %vm480_vm0 = vmmov 0   ;;  %v370_v1 = vld [vmem:[#allocation7] sm:$0xff]   ;;  %v371_v2 = vld [vmem:[#allocation4] sm:$0xff]   ;;  %v134_v11 = vlaneseq }
  0x37   :  { %334 = vmatprep.subr.bf16.mxu0 %v479_v0  ;;  %336 = vmatprep.mubr.msk.bf16.mxu0 %vm480_vm0, %v479_v0  ;;  %vm87_vm1 = vcmask 130048   ;;  %v372_v3 = vld [vmem:[#allocation9] sm:$0xff]   ;;  %v373_v4 = vld [vmem:[#allocation9 + $0x8] sm:$0xff]   ;;  %v374_v5 = vld [vmem:[#allocation9 + $0x10] sm:$0xff]   ;;  %s149_s10 = smul.u32 668265263, %s592_s0 }
  0x38   :  { %340 = vmatprep.subr.bf16.mxu1 %v479_v0  ;;  %356 = vmatprep.mubr.msk.bf16.mxu1 %vm480_vm0, %v479_v0  ;;  %v375_v6 = vld [vmem:[#allocation9 + $0x18] sm:$0xff]   ;;  %v376_v7 = vld [vmem:[#allocation9 + $0x20] sm:$0xff]   ;;  %v377_v8 = vld [vmem:[#allocation9 + $0x28] sm:$0xff]   ;;  %v135_v12 = vshrl.u32 %v134_v11, 7  ;;  %v142_v13 = vand.u32 127, %v134_v11  ;;  %s481_s13 = smov [#allocation10]  }
  0x39   :  { %335 = vmatpush3.bf16.msra.mxu0 %v370_v1  ;;  %341 = vmatpush3.bf16.msra.mxu1 %v372_v3  ;;  %v378_v9 = vld [vmem:[#allocation9 + $0x30] sm:$0xff]   ;;  %v379_v10 = vld [vmem:[#allocation9 + $0x38] sm:$0xff]   ;;  %v150_v19 = vstv %s149_s10  ;;  %s297_s14 = sshll.u32 %s481_s13, 4  ;;  %s298_s14 = int_to_ptr.vmem [resolvable:$true] %s297_s14 }
  0x3a   :  { %342 = vmatprep.subr.bf16.mxu1 %v479_v0  ;;  %v136_v14 = vadd.s32 8, %v135_v12  ;;  %v143_v15 = vmul.u32 2654435761, %v135_v12  ;;  %v145_v16 = vmul.u32 3266489917, %v142_v13  ;;  %s446_s15 = scalar_lea.vmem %s298_s14, 256  ;;  %p451_p11 = scmp.lt.s32.totalorder %s298_s14, %s298_s14 }
  0x3b   :  { %v310_v39 = vld [vmem:[%s595_s3] ss:$0 sm:$0xff]  ;;  %p447_p10 = scmp.ne.s32.totalorder %s298_s14, %s446_s15  ;;  %p452_p12 = scmp.lt.s32.totalorder %s446_s15, %s446_s15 }
  0x3c   :  { %337 = vmatmul.mubr.msk.bf16.vlgmr.msra.gmra.mrb[0].mxu0 %vm87_vm1, %v371_v2  ;;  %v144_v17 = vmul.u32 2654435761, %v136_v14  ;;  %v146_v18 = vadd.s32 %v145_v16, %v143_v15  ;;  %v314_v55 = vld [vmem:[%s597_s5] ss:$0 sm:$0xff] }
  0x3d   :  { %343 = vmatpush3.bf16.msra.mxu1 %v373_v4  ;;  %p453_p13 = por %p452_p12, %p451_p11 }
  0x3e   :  { %344 = vmatprep.subr.bf16.mxu1 %v479_v0  ;;  %v147_v20 = vadd.s32 %v145_v16, %v144_v17  ;;  %v151_v21 = vadd.s32 %v150_v19, %v146_v18 }
  0x3f   :  { %p454_p0 = pnand %p453_p13, %p447_p10 }
  0x40   :  { %v152_v22 = vadd.s32 %v150_v19, %v147_v20  ;;  %v153_v23 = vshra.s32 %v151_v21, 15 }
  0x41   :  { %345 = vmatpush3.bf16.msra.mxu1 %v374_v5 }
  0x42   :  { %346 = vmatprep.subr.bf16.mxu1 %v479_v0  ;;  %v154_v24 = vshra.s32 %v152_v22, 15  ;;  %v155_v25 = vxor.u32 %v153_v23, %v151_v21 }
  0x44   :  { %v156_v26 = vxor.u32 %v154_v24, %v152_v22  ;;  %v157_v27 = vmul.u32 2246822519, %v155_v25 }
  0x45   :  { %347 = vmatpush3.bf16.msra.mxu1 %v375_v6 }
  0x46   :  { %348 = vmatprep.subr.bf16.mxu1 %v479_v0  ;;  %v158_v28 = vmul.u32 2246822519, %v156_v26  ;;  %v159_v29 = vshra.s32 %v157_v27, 13 }
  0x48   :  { %v160_v30 = vshra.s32 %v158_v28, 13  ;;  %v161_v31 = vxor.u32 %v159_v29, %v157_v27 }
  0x49   :  { %349 = vmatpush3.bf16.msra.mxu1 %v376_v7 }
  0x4a   :  { %350 = vmatprep.subr.bf16.mxu1 %v479_v0  ;;  %v162_v32 = vxor.u32 %v160_v30, %v158_v28  ;;  %v163_v33 = vmul.u32 3266489909, %v161_v31 }
  0x4c   :  { %v164_v34 = vmul.u32 3266489909, %v162_v32  ;;  %v165_v35 = vshra.s32 %v163_v33, 16 }
  0x4d   :  { %351 = vmatpush3.bf16.msra.mxu1 %v377_v8 }
  0x4e   :  { %352 = vmatprep.subr.bf16.mxu1 %v479_v0  ;;  %v166_v36 = vshra.s32 %v164_v34, 16  ;;  %v167_v37 = vxor.u32 %v165_v35, %v163_v33 }
  0x50   :  { %v168_v38 = vxor.u32 %v166_v36, %v164_v34  ;;  %v169_v40 = vand.u32 8388607, %v167_v37 }
  0x51   :  { %353 = vmatpush3.bf16.msra.mxu1 %v378_v9 }
  0x52   :  { %354 = vmatprep.subr.bf16.mxu1 %v479_v0  ;;  %v170_v42 = vand.u32 8388607, %v168_v38  ;;  %vm171_vm2 = vcmp.ge.s32.totalorder %v169_v40, 4194304 }
  0x54   :  { %vm172_vm3 = vcmp.ge.s32.totalorder %v170_v42, 4194304 }
  0x55   :  { %355 = vmatpush3.bf16.msra.mxu1 %v379_v10 }
 0x10f   :  { %v125_v41 = vpop.f32.mrb[0].mxu0 }
 0x110   :  { %v126_v43 = vadd.f32 %v310_v39, %v125_v41  ;;  %v338_v44 = vpop.f32.mrb[1].mxu0 }
 0x111   :  { %v128_v45 = vpop.f32.mrb[2].mxu0 }
 0x112   :  { %v132_v46 = vmax.f32 %v126_v43, 0.0  ;;  %v129_v47 = vadd.f32 %v310_v39, %v128_v45  ;;  %v339_v48 = vpop.f32.mrb[3].mxu0 }
 0x114   :  { %v173_v49 = vsel %vm171_vm2, %v132_v46, 0.0  ;;  %v133_v50 = vmax.f32 %v129_v47, 0.0 }
 0x115   :  { %v175_v52 = vmul.f32 2.0, %v173_v49 }
 0x116   :  { %v174_v51 = vsel %vm172_vm3, %v133_v50, 0.0 }
 0x117   :  { %v176_v53 = vmul.f32 2.0, %v174_v51 }
 0x119   :  { %v177_v54 = vpack.c.bf16 %v176_v53, %v175_v52 }
 0x11b   :  { %357 = vmatmul.mubr.bf16.vlgmr.msra.gmra.mrb[0].mxu1 %v177_v54 }
 0x1ee   :  { %v283_v56 = vpop.f32.mrb[0].mxu1 }
 0x1ef   :  { %v284_v57 = vadd.f32 %v314_v55, %v283_v56  ;;  %v358_v58 = vpop.f32.mrb[1].mxu1 }
 0x1f0   :  { %v286_v59 = vpop.f32.mrb[2].mxu1 }
 0x1f1   :  { %290 = vst [vmem:[#allocation10] sm:$0xff] %v284_v57  ;;  %v287_v60 = vadd.f32 %v314_v55, %v286_v59  ;;  %v359_v61 = vpop.f32.mrb[3].mxu1 }
 0x1f3   :  { %291 = vst [vmem:[#allocation10 + $0x8] sm:$0xff] %v287_v60 }
 0x1f4   :  { %457 = shalt.err (!%p454_p0)
}
 0x1f5   :  { %s458_s17 = scalar_lea.hbm %s598_s6, 256 }
 0x1f6   :  { %p459_p1 = scmp.ne.s32.totalorder %s598_s6, %s458_s17  ;;  %p462_p2 = scmp.lt.u32.totalorder %s458_s17, %s598_s6 }
 0x1f8   :  { %p464_p3 = pnand %p462_p2, %p459_p1 }
 0x1fa   :  { %467 = shalt.err (!%p464_p3)
}
 0x1fb   :  { %s482_s21 = smov 128   ;;  %s483_s22 = smov 8  }
 0x1fc   :  { %303 = dma.vmem_to_hbm [thread:$0]  %s298_s14, 256, %s598_s6, [#allocation6], %s482_s21, %s482_s21, %s483_s22  }
 0x1fd   :  { %472 = dma.done.wait [#allocation6], 256  }
 0x1fe   :  { %473 = vsyncadd [#allocation6], 4294967040 }
 0x1ff   :  { %307 = vsyncpa [#allocation5], 1 }
 0x200   :  { %308 = vsyncpa [#allocation8], 1 }
 0x201   :  { %309 = vsyncpa [#allocation6], 1 }

</bundles_post_ra>
